<compile_context>
chip_gen: v6e
topology: v6e:2x2x1
jax: 0.10.0
libtpu: 0.0.40
codegen_flags: <defaults>
</compile_context>

<pallas_src>
import functools
from typing import NamedTuple

import jax
import jax.numpy as jnp
from jax.experimental import pallas as pl
from jax.experimental.pallas import tpu as pltpu


def _round_up(x, m):
    return ((x + m - 1) // m) * m


# --------------------------------------------------------------------------
# Kernel
# --------------------------------------------------------------------------
def _net_kernel(x_ref, w1_ref, b1_ref, wca_ref, bca_ref, wo_ref, bo_ref,
                out_ref, *, out_split):
    # share_layer: Linear -> Dropout(eval: identity) -> Tanh
    h = jnp.tanh(
        jnp.dot(x_ref[...], w1_ref[...], preferred_element_type=jnp.float32)
        + b1_ref[...])
    h = h.astype(w1_ref.dtype)          # bf16 so the next dot takes the MXU bf16 path

    # fused class_layer + auxiliary_layer: one wide dot, one tanh
    ca = jnp.tanh(
        jnp.dot(h, wca_ref[...], preferred_element_type=jnp.float32)
        + bca_ref[...])
    ca = ca.astype(wca_ref.dtype)

    # fused output heads: packed weight yields [o1-o2 | o2 | zero-pad] (lane width 128)
    o = jnp.dot(ca, wo_ref[...], preferred_element_type=jnp.float32) + bo_ref[...]

    # out1 = tanh(o1 - o2) lives in cols [0, out_split); o2 in [out_split, 2*out_split)
    col = jax.lax.broadcasted_iota(jnp.int32, o.shape, dimension=1)
    out_ref[...] = jnp.where(col < out_split, jnp.tanh(o), o)


# --------------------------------------------------------------------------
# One-time parameter packing (hoisted out of the forward hot path)
# --------------------------------------------------------------------------
class PackedParams(NamedTuple):
    w1: jax.Array     # (F, HP)    bf16
    b1: jax.Array     # (1, HP)    f32
    wca: jax.Array    # (HP, CAP)  bf16
    bca: jax.Array    # (1, CAP)   f32
    wo: jax.Array     # (CAP, OP)  bf16
    bo: jax.Array     # (1, OP)    f32
    out_size: int
    o10: int


def pack_params(params, *, compute_dtype=jnp.bfloat16):
    (w1, b1, wc, bc, wa, ba, wco, bco, wao, bao) = [
        jnp.asarray(p, jnp.float32) for p in params]
    F, HIDE = w1.shape
    O10 = wc.shape[1]
    OUT = wco.shape[1]
    HP = _round_up(HIDE, 128)                    # padded hidden width
    CAP = _round_up(2 * O10, 128)                # padded fused class+aux width
    OP = max(128, _round_up(2 * OUT, 128))       # padded lane-dense output width

    # share layer, zero-padded to HP (padded h columns come out exactly 0)
    w1p = jnp.zeros((F, HP), jnp.float32).at[:, :HIDE].set(w1)
    b1p = jnp.zeros((1, HP), jnp.float32).at[:, :HIDE].set(b1)

    # fused class+aux layer: h(HP) -> [class | aux | 0] (CAP)
    wca = jnp.zeros((HP, CAP), jnp.float32)
    wca = wca.at[:HIDE, :O10].set(wc).at[:HIDE, O10:2 * O10].set(wa)
    bca = jnp.zeros((1, CAP), jnp.float32)
    bca = bca.at[:, :O10].set(bc).at[:, O10:2 * O10].set(ba)

    # packed output heads: ca(CAP) -> [o1 - o2 | o2 | 0] (OP)
    wo = jnp.zeros((CAP, OP), jnp.float32)
    wo = wo.at[:O10, :OUT].set(wco)                  # + o1 (from class part of ca)
    wo = wo.at[O10:2 * O10, :OUT].set(-wao)          # - o2 (from aux part of ca)
    wo = wo.at[O10:2 * O10, OUT:2 * OUT].set(wao)    #   o2
    bo = jnp.zeros((1, OP), jnp.float32)
    bo = bo.at[:, :OUT].set(bco - bao).at[:, OUT:2 * OUT].set(bao)

    return PackedParams(
        w1=w1p.astype(compute_dtype), b1=b1p,
        wca=wca.astype(compute_dtype), bca=bca,
        wo=wo.astype(compute_dtype), bo=bo,
        out_size=int(OUT), o10=int(O10))


# --------------------------------------------------------------------------
# Forward wrapper
# --------------------------------------------------------------------------
def _vmem_needed(TB, F, HP, CAP, OP):
    """Conservative VMEM footprint estimate (assumes double-buffered weights)."""
    x_bytes = 2 * TB * F * 2                                      # bf16 x tile, 2 buffers
    w_bytes = 2 * (F * HP * 2 + HP * 4 + HP * CAP * 2 + CAP * 4
                   + CAP * OP * 2 + OP * 4)
    out_bytes = 2 * TB * OP * 4                                   # f32 out tile, 2 buffers
    interm = TB * (HP + CAP + OP) * 8                             # f32 + bf16 h/ca/o temps
    return x_bytes + w_bytes + out_bytes + interm


def net_forward(x, params, *, tb=512):
    """x: (B, D, 3) or (D, 3). Returns (tanh(out1 - out2), out2), each (B, OUT)."""
    if not isinstance(params, PackedParams):
        params = pack_params(params)          # convenience; prefer packing once at init
    packed = params

    if x.ndim == 2:
        x = x[None, ...]                      # x.unsqueeze(0)
    B = x.shape[0]
    x_flat = x.reshape(B, -1).astype(packed.w1.dtype)   # x.view(B, -1), bf16
    F = x_flat.shape[1]
    HP = packed.w1.shape[1]
    CAP = packed.wca.shape[1]
    OP = packed.wo.shape[1]
    OUT = packed.out_size

    # ---- batch tile selection ----
    bp8 = _round_up(B, 8)
    TB = max(8, (min(tb, bp8) // 8) * 8)
    # v7x megacore: guarantee >=2 grid steps when the batch allows it
    if bp8 // TB < 2 and bp8 >= 16:
        TB = max(8, _round_up((bp8 + 1) // 2, 8))
    # keep within a v7x-safe working VMEM budget by shrinking TB if needed
    VMEM_BUDGET = 48 << 20
    while _vmem_needed(TB, F, HP, CAP, OP) > VMEM_BUDGET and TB > 8:
        TB = max(8, _round_up(TB // 2, 8))
    Bp = _round_up(bp8, TB)
    if Bp != B:
        x_flat = jnp.pad(x_flat, ((0, Bp - B), (0, 0)))

    vmem_limit = int(min(64 << 20,
                         max(_vmem_needed(TB, F, HP, CAP, OP) + (8 << 20), 32 << 20)))

    cost = pl.CostEstimate(
        flops=2 * Bp * (F * HP + HP * CAP + CAP * OP),
        transcendentals=Bp * (HP + CAP + OP),
        bytes_accessed=(Bp * F * 2                       # bf16 x read
                        + F * HP * 2 + HP * CAP * 2 + CAP * OP * 2
                        + (HP + CAP + OP) * 4
                        + Bp * OP * 4))                  # f32 out write

    kernel = functools.partial(_net_kernel, out_split=OUT)

    def _call(single_buffer_weights):
        wmode = ({"pipeline_mode": pl.Buffered(1)}
                 if single_buffer_weights else {})

        def wspec(arr):
            return pl.BlockSpec(arr.shape, lambda i: (0, 0), **wmode)

        return pl.pallas_call(
            kernel,
            out_shape=jax.ShapeDtypeStruct((Bp, OP), jnp.float32),
            grid_spec=pltpu.PrefetchScalarGridSpec(
                num_scalar_prefetch=0,
                grid=(Bp // TB,),
                in_specs=[
                    pl.BlockSpec((TB, F), lambda i: (i, 0)),   # x tile (pipelined)
                    wspec(packed.w1), wspec(packed.b1),        # weights: VMEM-resident
                    wspec(packed.wca), wspec(packed.bca),
                    wspec(packed.wo), wspec(packed.bo),
                ],
                out_specs=pl.BlockSpec((TB, OP), lambda i: (i, 0)),
            ),
            compiler_params=pltpu.CompilerParams(
                dimension_semantics=("parallel",),
                vmem_limit_bytes=vmem_limit),
            cost_estimate=cost,
        )(x_flat, packed.w1, packed.b1, packed.wca, packed.bca,
          packed.wo, packed.bo)

    try:
        out = _call(True)
    except Exception:
        # TODO(synk): pl.Buffered(1) single-buffering rejected on this build;
        # fall back to default double-buffered weights (same semantics).
        out = _call(False)

    out1 = out[:B, :OUT]            # tanh(o1 - o2)
    out2 = out[:B, OUT:2 * OUT]     # o2
    return out1, out2


# --------------------------------------------------------------------------
# Parameter init + pure-JAX references
# --------------------------------------------------------------------------
def init_linear(key, fan_in, fan_out):
    """Deterministic uniform(-1/sqrt(fan_in), 1/sqrt(fan_in)) init (PyTorch-like)."""
    kw, kb = jax.random.split(key)
    bound = 1.0 / jnp.sqrt(jnp.float32(fan_in))
    w = jax.random.uniform(kw, (fan_in, fan_out), jnp.float32, -bound, bound)
    b = jax.random.uniform(kb, (1, fan_out), jnp.float32, -bound, bound)
    return w, b


def make_params(input_dim0, hide_size, output_size, key):
    f_in = input_dim0 * 3
    o10 = output_size * 10
    keys = jax.random.split(key, 5)
    w1, b1 = init_linear(keys[0], f_in, hide_size)
    wc, bc = init_linear(keys[1], hide_size, o10)
    wa, ba = init_linear(keys[2], hide_size, o10)
    wco, bco = init_linear(keys[3], o10, output_size)
    wao, bao = init_linear(keys[4], o10, output_size)
    return (w1, b1, wc, bc, wa, ba, wco, bco, wao, bao)


def net_forward_ref(x, params):
    """Pure-JAX f32 reference (unfused)."""
    if x.ndim == 2:
        x = x[None, ...]
    x = x.reshape(x.shape[0], -1)
    (w1, b1, wc, bc, wa, ba, wco, bco, wao, bao) = params
    h = jnp.tanh(x @ w1 + b1)
    c = jnp.tanh(h @ wc + bc)
    a = jnp.tanh(h @ wa + ba)
    o1 = c @ wco + bco
    o2 = a @ wao + bao
    return jnp.tanh(o1 - o2), o2


def net_forward_ref_bf16(x, params):
    """Pure-JAX reference using the kernel's bf16 compute dtype (f32 accumulation)."""
    if x.ndim == 2:
        x = x[None, ...]
    x = x.reshape(x.shape[0], -1).astype(jnp.bfloat16)
    (w1, b1, wc, bc, wa, ba, wco, bco, wao, bao) = params
    bf = lambda a: jnp.asarray(a, jnp.float32).astype(jnp.bfloat16)
    dot = lambda a, b: jnp.dot(a, b, preferred_element_type=jnp.float32)
    h = jnp.tanh(dot(x, bf(w1)) + b1).astype(jnp.bfloat16)
    c = jnp.tanh(dot(h, bf(wc)) + bc).astype(jnp.bfloat16)
    a = jnp.tanh(dot(h, bf(wa)) + ba).astype(jnp.bfloat16)
    o1 = dot(c, bf(wco)) + bco
    o2 = dot(a, bf(wao)) + bao
    return jnp.tanh(o1 - o2), o2


if __name__ == "__main__":
    # Small shapes: input_size = (16,), hide_size = 32, output_size = 4, batch = 2.
    B, D, HIDE, OUT = 2, 16, 32, 4

    key = jax.random.PRNGKey(0)
    kx, kp = jax.random.split(key)
    x = jax.random.normal(kx, (B, D, 3), jnp.float32)
    params = make_params(D, HIDE, OUT, kp)
    packed = pack_params(params)          # one-time packing, out of the hot path

    out1, out2 = net_forward(x, packed)
    jax.block_until_ready((out1, out2))

    assert out1.shape == (B, OUT) and out2.shape == (B, OUT)

    # Tight check vs a reference that uses the same bf16 compute dtype.
    q1, q2 = net_forward_ref_bf16(x, params)
    assert jnp.allclose(out1, q1, atol=1e-3), "output_1 mismatch (bf16 ref)"
    assert jnp.allclose(out2, q2, atol=1e-3), "output_2 mismatch (bf16 ref)"

    # Loose check vs the full-precision reference (bf16 inputs => ~1e-3..1e-2 error).
    r1, r2 = net_forward_ref(x, params)
    assert jnp.allclose(out1, r1, atol=5e-2), "output_1 mismatch (f32 ref)"
    assert jnp.allclose(out2, r2, atol=5e-2), "output_2 mismatch (f32 ref)"

    print("KERNEL_OK")
</pallas_src>

<mosaic_0001>
module attributes {stable_mosaic.version = 11 : i64} {
  func.func @_net_kernel(%arg0: i32, %arg1: memref<8x48xbf16, #tpu.memory_space<vmem>>, %arg2: memref<48x128xbf16, #tpu.memory_space<vmem>>, %arg3: memref<1x128xf32, #tpu.memory_space<vmem>>, %arg4: memref<128x128xbf16, #tpu.memory_space<vmem>>, %arg5: memref<1x128xf32, #tpu.memory_space<vmem>>, %arg6: memref<128x128xbf16, #tpu.memory_space<vmem>>, %arg7: memref<1x128xf32, #tpu.memory_space<vmem>>, %arg8: memref<8x128xf32, #tpu.memory_space<vmem>>) attributes {dimension_semantics = [#tpu.dimension_semantics<parallel>], iteration_bounds = array<i64: 1>, scalar_prefetch = 0 : i64, scratch_operands = 0 : i64, tpu.core_type = #tpu.core_type<tc>, window_params = [{transform_indices = @transform_0, window_bounds = array<i64: 8, 48>}, {pipeline_mode = #tpu.pipeline_mode<synchronous>, transform_indices = @transform_1, window_bounds = array<i64: 48, 128>}, {pipeline_mode = #tpu.pipeline_mode<synchronous>, transform_indices = @transform_2, window_bounds = array<i64: 1, 128>}, {pipeline_mode = #tpu.pipeline_mode<synchronous>, transform_indices = @transform_3, window_bounds = array<i64: 128, 128>}, {pipeline_mode = #tpu.pipeline_mode<synchronous>, transform_indices = @transform_4, window_bounds = array<i64: 1, 128>}, {pipeline_mode = #tpu.pipeline_mode<synchronous>, transform_indices = @transform_5, window_bounds = array<i64: 128, 128>}, {pipeline_mode = #tpu.pipeline_mode<synchronous>, transform_indices = @transform_6, window_bounds = array<i64: 1, 128>}, {transform_indices = @transform_7, window_bounds = array<i64: 8, 128>}]} {
    %c0 = arith.constant 0 : index
    %c0_0 = arith.constant 0 : index
    %0 = vector.load %arg1[%c0, %c0_0] : memref<8x48xbf16, #tpu.memory_space<vmem>>, vector<8x48xbf16>
    %c0_1 = arith.constant 0 : index
    %c0_2 = arith.constant 0 : index
    %1 = vector.load %arg2[%c0_1, %c0_2] : memref<48x128xbf16, #tpu.memory_space<vmem>>, vector<48x128xbf16>
    %cst = arith.constant dense<0.000000e+00> : vector<8x128xf32>
    %2 = tpu.matmul %0, %1, %cst {dimension_numbers = #tpu.dot_dimension_numbers<[1], [0], [0], [1], [0, 0, 1, 1], [], []>} : vector<8x48xbf16>, vector<48x128xbf16>, vector<8x128xf32> -> vector<8x128xf32>
    %c0_3 = arith.constant 0 : index
    %c0_4 = arith.constant 0 : index
    %3 = vector.load %arg3[%c0_3, %c0_4] : memref<1x128xf32, #tpu.memory_space<vmem>>, vector<1x128xf32>
    %4 = vector.broadcast %3 : vector<1x128xf32> to vector<8x128xf32>
    %5 = arith.addf %2, %4 : vector<8x128xf32>
    %6 = math.tanh %5 : vector<8x128xf32>
    %7 = arith.truncf %6 : vector<8x128xf32> to vector<8x128xbf16>
    %c0_5 = arith.constant 0 : index
    %c0_6 = arith.constant 0 : index
    %8 = vector.load %arg4[%c0_5, %c0_6] : memref<128x128xbf16, #tpu.memory_space<vmem>>, vector<128x128xbf16>
    %cst_7 = arith.constant dense<0.000000e+00> : vector<8x128xf32>
    %9 = tpu.matmul %7, %8, %cst_7 {dimension_numbers = #tpu.dot_dimension_numbers<[1], [0], [0], [1], [0, 0, 1, 1], [], []>} : vector<8x128xbf16>, vector<128x128xbf16>, vector<8x128xf32> -> vector<8x128xf32>
    %c0_8 = arith.constant 0 : index
    %c0_9 = arith.constant 0 : index
    %10 = vector.load %arg5[%c0_8, %c0_9] : memref<1x128xf32, #tpu.memory_space<vmem>>, vector<1x128xf32>
    %11 = vector.broadcast %10 : vector<1x128xf32> to vector<8x128xf32>
    %12 = arith.addf %9, %11 : vector<8x128xf32>
    %13 = math.tanh %12 : vector<8x128xf32>
    %14 = arith.truncf %13 : vector<8x128xf32> to vector<8x128xbf16>
    %c0_10 = arith.constant 0 : index
    %c0_11 = arith.constant 0 : index
    %15 = vector.load %arg6[%c0_10, %c0_11] : memref<128x128xbf16, #tpu.memory_space<vmem>>, vector<128x128xbf16>
    %cst_12 = arith.constant dense<0.000000e+00> : vector<8x128xf32>
    %16 = tpu.matmul %14, %15, %cst_12 {dimension_numbers = #tpu.dot_dimension_numbers<[1], [0], [0], [1], [0, 0, 1, 1], [], []>} : vector<8x128xbf16>, vector<128x128xbf16>, vector<8x128xf32> -> vector<8x128xf32>
    %c0_13 = arith.constant 0 : index
    %c0_14 = arith.constant 0 : index
    %17 = vector.load %arg7[%c0_13, %c0_14] : memref<1x128xf32, #tpu.memory_space<vmem>>, vector<1x128xf32>
    %18 = vector.broadcast %17 : vector<1x128xf32> to vector<8x128xf32>
    %19 = arith.addf %16, %18 : vector<8x128xf32>
    %20 = tpu.iota {dimensions = array<i32: 1>} : vector<8x128xi32>
    %c4_i32 = arith.constant 4 : i32
    %21 = vector.broadcast %c4_i32 : i32 to vector<8x128xi32>
    %22 = arith.cmpi slt, %20, %21 : vector<8x128xi32>
    %23 = math.tanh %19 : vector<8x128xf32>
    %24 = arith.select %22, %23, %19 : vector<8x128xi1>, vector<8x128xf32>
    %c0_15 = arith.constant 0 : index
    %c0_16 = arith.constant 0 : index
    %25 = vector.load %arg8[%c0_15, %c0_16] : memref<8x128xf32, #tpu.memory_space<vmem>>, vector<8x128xf32>
    tpu.vector_store %arg8[%c0_15, %c0_16], %24 {strides = array<i32>} : memref<8x128xf32, #tpu.memory_space<vmem>>, vector<8x128xf32>,
    return
  }
  func.func @transform_0(%arg0: i32) -> (i32, i32) {
    %c0_i32 = arith.constant 0 : i32
    %c0_i32_0 = arith.constant 0 : i32
    return %arg0, %c0_i32 : i32, i32
  }
  func.func @transform_1(%arg0: i32) -> (i32, i32) {
    %c0_i32 = arith.constant 0 : i32
    %c0_i32_0 = arith.constant 0 : i32
    %c0_i32_1 = arith.constant 0 : i32
    return %c0_i32, %c0_i32_0 : i32, i32
  }
  func.func @transform_2(%arg0: i32) -> (i32, i32) {
    %c0_i32 = arith.constant 0 : i32
    %c0_i32_0 = arith.constant 0 : i32
    %c0_i32_1 = arith.constant 0 : i32
    return %c0_i32, %c0_i32_0 : i32, i32
  }
  func.func @transform_3(%arg0: i32) -> (i32, i32) {
    %c0_i32 = arith.constant 0 : i32
    %c0_i32_0 = arith.constant 0 : i32
    %c0_i32_1 = arith.constant 0 : i32
    return %c0_i32, %c0_i32_0 : i32, i32
  }
  func.func @transform_4(%arg0: i32) -> (i32, i32) {
    %c0_i32 = arith.constant 0 : i32
    %c0_i32_0 = arith.constant 0 : i32
    %c0_i32_1 = arith.constant 0 : i32
    return %c0_i32, %c0_i32_0 : i32, i32
  }
  func.func @transform_5(%arg0: i32) -> (i32, i32) {
    %c0_i32 = arith.constant 0 : i32
    %c0_i32_0 = arith.constant 0 : i32
    %c0_i32_1 = arith.constant 0 : i32
    return %c0_i32, %c0_i32_0 : i32, i32
  }
  func.func @transform_6(%arg0: i32) -> (i32, i32) {
    %c0_i32 = arith.constant 0 : i32
    %c0_i32_0 = arith.constant 0 : i32
    %c0_i32_1 = arith.constant 0 : i32
    return %c0_i32, %c0_i32_0 : i32, i32
  }
  func.func @transform_7(%arg0: i32) -> (i32, i32) {
    %c0_i32 = arith.constant 0 : i32
    %c0_i32_0 = arith.constant 0 : i32
    return %arg0, %c0_i32 : i32, i32
  }
}

module attributes {stable_mosaic.version = 11 : i64} {
  func.func @_net_kernel(%arg0: i32, %arg1: memref<8x48xbf16, #tpu.memory_space<vmem>>, %arg2: memref<48x128xbf16, #tpu.memory_space<vmem>>, %arg3: memref<1x128xf32, #tpu.memory_space<vmem>>, %arg4: memref<128x128xbf16, #tpu.memory_space<vmem>>, %arg5: memref<1x128xf32, #tpu.memory_space<vmem>>, %arg6: memref<128x128xbf16, #tpu.memory_space<vmem>>, %arg7: memref<1x128xf32, #tpu.memory_space<vmem>>, %arg8: memref<8x128xf32, #tpu.memory_space<vmem>>) attributes {dimension_semantics = [#tpu.dimension_semantics<parallel>], iteration_bounds = array<i64: 1>, scalar_prefetch = 0 : i64, scratch_operands = 0 : i64, tpu.core_type = #tpu.core_type<tc>, window_params = [{transform_indices = @transform_0, window_bounds = array<i64: 8, 48>}, {pipeline_mode = #tpu.pipeline_mode<synchronous>, transform_indices = @transform_1, window_bounds = array<i64: 48, 128>}, {pipeline_mode = #tpu.pipeline_mode<synchronous>, transform_indices = @transform_2, window_bounds = array<i64: 1, 128>}, {pipeline_mode = #tpu.pipeline_mode<synchronous>, transform_indices = @transform_3, window_bounds = array<i64: 128, 128>}, {pipeline_mode = #tpu.pipeline_mode<synchronous>, transform_indices = @transform_4, window_bounds = array<i64: 1, 128>}, {pipeline_mode = #tpu.pipeline_mode<synchronous>, transform_indices = @transform_5, window_bounds = array<i64: 128, 128>}, {pipeline_mode = #tpu.pipeline_mode<synchronous>, transform_indices = @transform_6, window_bounds = array<i64: 1, 128>}, {transform_indices = @transform_7, window_bounds = array<i64: 8, 128>}]} {
    %c0 = arith.constant 0 : index
    %c0_0 = arith.constant 0 : index
    %0 = vector.load %arg1[%c0, %c0_0] : memref<8x48xbf16, #tpu.memory_space<vmem>>, vector<8x48xbf16>
    %c0_1 = arith.constant 0 : index
    %c0_2 = arith.constant 0 : index
    %1 = vector.load %arg2[%c0_1, %c0_2] : memref<48x128xbf16, #tpu.memory_space<vmem>>, vector<48x128xbf16>
    %cst = arith.constant dense<0.000000e+00> : vector<8x128xf32>
    %2 = tpu.matmul %0, %1, %cst {dimension_numbers = #tpu.dot_dimension_numbers<[1], [0], [0], [1], [0, 0, 1, 1], [], []>} : vector<8x48xbf16>, vector<48x128xbf16>, vector<8x128xf32> -> vector<8x128xf32>
    %c0_3 = arith.constant 0 : index
    %c0_4 = arith.constant 0 : index
    %3 = vector.load %arg3[%c0_3, %c0_4] : memref<1x128xf32, #tpu.memory_space<vmem>>, vector<1x128xf32>
    %4 = vector.broadcast %3 : vector<1x128xf32> to vector<8x128xf32>
    %5 = arith.addf %2, %4 : vector<8x128xf32>
    %6 = math.tanh %5 : vector<8x128xf32>
    %7 = arith.truncf %6 : vector<8x128xf32> to vector<8x128xbf16>
    %c0_5 = arith.constant 0 : index
    %c0_6 = arith.constant 0 : index
    %8 = vector.load %arg4[%c0_5, %c0_6] : memref<128x128xbf16, #tpu.memory_space<vmem>>, vector<128x128xbf16>
    %cst_7 = arith.constant dense<0.000000e+00> : vector<8x128xf32>
    %9 = tpu.matmul %7, %8, %cst_7 {dimension_numbers = #tpu.dot_dimension_numbers<[1], [0], [0], [1], [0, 0, 1, 1], [], []>} : vector<8x128xbf16>, vector<128x128xbf16>, vector<8x128xf32> -> vector<8x128xf32>
    %c0_8 = arith.constant 0 : index
    %c0_9 = arith.constant 0 : index
    %10 = vector.load %arg5[%c0_8, %c0_9] : memref<1x128xf32, #tpu.memory_space<vmem>>, vector<1x128xf32>
    %11 = vector.broadcast %10 : vector<1x128xf32> to vector<8x128xf32>
    %12 = arith.addf %9, %11 : vector<8x128xf32>
    %13 = math.tanh %12 : vector<8x128xf32>
    %14 = arith.truncf %13 : vector<8x128xf32> to vector<8x128xbf16>
    %c0_10 = arith.constant 0 : index
    %c0_11 = arith.constant 0 : index
    %15 = vector.load %arg6[%c0_10, %c0_11] : memref<128x128xbf16, #tpu.memory_space<vmem>>, vector<128x128xbf16>
    %cst_12 = arith.constant dense<0.000000e+00> : vector<8x128xf32>
    %16 = tpu.matmul %14, %15, %cst_12 {dimension_numbers = #tpu.dot_dimension_numbers<[1], [0], [0], [1], [0, 0, 1, 1], [], []>} : vector<8x128xbf16>, vector<128x128xbf16>, vector<8x128xf32> -> vector<8x128xf32>
    %c0_13 = arith.constant 0 : index
    %c0_14 = arith.constant 0 : index
    %17 = vector.load %arg7[%c0_13, %c0_14] : memref<1x128xf32, #tpu.memory_space<vmem>>, vector<1x128xf32>
    %18 = vector.broadcast %17 : vector<1x128xf32> to vector<8x128xf32>
    %19 = arith.addf %16, %18 : vector<8x128xf32>
    %20 = tpu.iota {dimensions = array<i32: 1>} : vector<8x128xi32>
    %c4_i32 = arith.constant 4 : i32
    %21 = vector.broadcast %c4_i32 : i32 to vector<8x128xi32>
    %22 = arith.cmpi slt, %20, %21 : vector<8x128xi32>
    %23 = math.tanh %19 : vector<8x128xf32>
    %24 = arith.select %22, %23, %19 : vector<8x128xi1>, vector<8x128xf32>
    %c0_15 = arith.constant 0 : index
    %c0_16 = arith.constant 0 : index
    %25 = vector.load %arg8[%c0_15, %c0_16] : memref<8x128xf32, #tpu.memory_space<vmem>>, vector<8x128xf32>
    tpu.vector_store %arg8[%c0_15, %c0_16], %24 {strides = array<i32>} : memref<8x128xf32, #tpu.memory_space<vmem>>, vector<8x128xf32>,
    return
  }
  func.func @transform_0(%arg0: i32) -> (i32, i32) {
    %c0_i32 = arith.constant 0 : i32
    %c0_i32_0 = arith.constant 0 : i32
    return %arg0, %c0_i32 : i32, i32
  }
  func.func @transform_1(%arg0: i32) -> (i32, i32) {
    %c0_i32 = arith.constant 0 : i32
    %c0_i32_0 = arith.constant 0 : i32
    %c0_i32_1 = arith.constant 0 : i32
    return %c0_i32, %c0_i32_0 : i32, i32
  }
  func.func @transform_2(%arg0: i32) -> (i32, i32) {
    %c0_i32 = arith.constant 0 : i32
    %c0_i32_0 = arith.constant 0 : i32
    %c0_i32_1 = arith.constant 0 : i32
    return %c0_i32, %c0_i32_0 : i32, i32
  }
  func.func @transform_3(%arg0: i32) -> (i32, i32) {
    %c0_i32 = arith.constant 0 : i32
    %c0_i32_0 = arith.constant 0 : i32
    %c0_i32_1 = arith.constant 0 : i32
    return %c0_i32, %c0_i32_0 : i32, i32
  }
  func.func @transform_4(%arg0: i32) -> (i32, i32) {
    %c0_i32 = arith.constant 0 : i32
    %c0_i32_0 = arith.constant 0 : i32
    %c0_i32_1 = arith.constant 0 : i32
    return %c0_i32, %c0_i32_0 : i32, i32
  }
  func.func @transform_5(%arg0: i32) -> (i32, i32) {
    %c0_i32 = arith.constant 0 : i32
    %c0_i32_0 = arith.constant 0 : i32
    %c0_i32_1 = arith.constant 0 : i32
    return %c0_i32, %c0_i32_0 : i32, i32
  }
  func.func @transform_6(%arg0: i32) -> (i32, i32) {
    %c0_i32 = arith.constant 0 : i32
    %c0_i32_0 = arith.constant 0 : i32
    %c0_i32_1 = arith.constant 0 : i32
    return %c0_i32, %c0_i32_0 : i32, i32
  }
  func.func @transform_7(%arg0: i32) -> (i32, i32) {
    %c0_i32 = arith.constant 0 : i32
    %c0_i32_0 = arith.constant 0 : i32
    return %arg0, %c0_i32 : i32, i32
  }
}

</mosaic_0001>

<bundles_post_ra>
// kernel: tpu_custom_call.1
= control target key start
LH: loop header
LB: loop body
LE: loop exit
PB: predicated region body
PF: predicated region fallthrough
CT: control target
= control target key end

     0   :  { %12 = vsyncpa [#allocation3], 0  ;;  %s750_s0 = inlined_call_operand.hbm [shape: bf16[8,48], index: 0, kind: input, shape index: {}]   ;;  %s751_s1 = inlined_call_operand.hbm [shape: bf16[48,128], index: 1, kind: input, shape index: {}]   ;;  %s752_s2 = inlined_call_operand.vmem [shape: f32[1,128], index: 2, kind: input, shape index: {}]   ;;  %s753_s3 = inlined_call_operand.hbm [shape: bf16[128,128], index: 3, kind: input, shape index: {}]   ;;  %s754_s4 = inlined_call_operand.vmem [shape: f32[1,128], index: 4, kind: input, shape index: {}]   ;;  %s755_s5 = inlined_call_operand.hbm [shape: bf16[128,128], index: 5, kind: input, shape index: {}]   ;;  %s756_s6 = inlined_call_operand.vmem [shape: f32[1,128], index: 6, kind: input, shape index: {}]   ;;  %s757_s7 = inlined_call_operand.hbm [shape: f32[8,128], index: 7, kind: output, shape index: {}]  }
   0x1   :  { %13 = vsyncpa [#allocation6], 0 }
   0x2   :  { %14 = vsyncpa [#allocation9], 0 }
   0x3   :  { %15 = vsyncpa [#allocation4], 0  ;;  %s643_s24 = smov [#allocation5]  }
   0x4   :  { %s31_s25 = sshll.u32 %s643_s24, 4  ;;  %s32_s25 = int_to_ptr.vmem [resolvable:$true] %s31_s25 }
   0x5   :  { %s543_s26 = scalar_lea.vmem %s32_s25, 384  ;;  %p548_p1 = scmp.lt.s32.totalorder %s32_s25, %s32_s25 }
   0x6   :  { %p544_p0 = scmp.ne.s32.totalorder %s32_s25, %s543_s26  ;;  %p549_p2 = scmp.lt.s32.totalorder %s543_s26, %s543_s26 }
   0x8   :  { %p550_p3 = por %p549_p2, %p548_p1 }
   0xa   :  { %p551_p4 = pnand %p550_p3, %p544_p0 }
   0xc   :  { %554 = shalt.err (!%p551_p4)
}
   0xd   :  { %s644_s27 = smov 64   ;;  %s645_s28 = smov 4  }
   0xe   :  { %37 = dma.hbm_to_vmem [thread:$0]  %s751_s1, 384, %s32_s25, [#allocation6], %s644_s27, %s644_s27, %s645_s28  }
   0xf   :  { %s646_s8 = smov [#allocation2]   ;;  %s647_s10 = smov [#allocation7]  }
  0x10   :  { %s22_s9 = sshll.u32 %s646_s8, 4  ;;  %s45_s11 = sshll.u32 %s647_s10, 4  ;;  %s23_s9 = int_to_ptr.vmem [resolvable:$true] %s22_s9  ;;  %s46_s11 = int_to_ptr.vmem [resolvable:$true] %s45_s11 }
  0x11   :  { %s563_s12 = scalar_lea.vmem %s23_s9, 64  ;;  %p568_p6 = scmp.lt.s32.totalorder %s23_s9, %s23_s9 }
  0x12   :  { %p564_p5 = scmp.ne.s32.totalorder %s23_s9, %s563_s12  ;;  %p569_p7 = scmp.lt.s32.totalorder %s563_s12, %s563_s12 }
  0x14   :  { %p570_p8 = por %p569_p7, %p568_p6 }
  0x16   :  { %p571_p9 = pnand %p570_p8, %p564_p5 }
  0x18   :  { %574 = shalt.err (!%p571_p9)
}
  0x19   :  { %25 = dma.hbm_to_vmem [thread:$0]  %s750_s0, 64, %s23_s9, [#allocation3]  }
  0x1a   :  { %s583_s15 = scalar_lea.vmem %s46_s11, 1024  ;;  %p588_p11 = scmp.lt.s32.totalorder %s46_s11, %s46_s11 }
  0x1b   :  { %p584_p10 = scmp.ne.s32.totalorder %s46_s11, %s583_s15  ;;  %p589_p12 = scmp.lt.s32.totalorder %s583_s15, %s583_s15 }
  0x1d   :  { %p590_p13 = por %p589_p12, %p588_p11 }
  0x1f   :  { %p591_p0 = pnand %p590_p13, %p584_p10 }
  0x21   :  { %594 = shalt.err (!%p591_p0)
}
  0x22   :  { %51 = dma.hbm_to_vmem [thread:$0]  %s753_s3, 1024, %s46_s11, [#allocation6], %s644_s27, %s644_s27, %s645_s28  }
  0x23   :  { %s648_s17 = smov [#allocation8]  }
  0x24   :  { %s59_s18 = sshll.u32 %s648_s17, 4  ;;  %s60_s18 = int_to_ptr.vmem [resolvable:$true] %s59_s18 }
  0x25   :  { %s603_s19 = scalar_lea.vmem %s60_s18, 1024  ;;  %p608_p2 = scmp.lt.s32.totalorder %s60_s18, %s60_s18 }
  0x26   :  { %p604_p1 = scmp.ne.s32.totalorder %s60_s18, %s603_s19  ;;  %p609_p3 = scmp.lt.s32.totalorder %s603_s19, %s603_s19 }
  0x28   :  { %p610_p4 = por %p609_p3, %p608_p2 }
  0x2a   :  { %p611_p5 = pnand %p610_p4, %p604_p1 }
  0x2c   :  { %614 = shalt.err (!%p611_p5)
}
  0x2d   :  { %65 = dma.hbm_to_vmem [thread:$0]  %s755_s5, 1024, %s60_s18, [#allocation9], %s644_s27, %s644_s27, %s645_s28  }
  0x2e   :  { %635 = dma.done.wait [#allocation3], 64  }
  0x2f   :  { %636 = vsyncadd [#allocation3], 4294967232 }
  0x30   :  { %637 = dma.done.wait [#allocation6], 1408  }
  0x31   :  { %638 = vsyncadd [#allocation6], 4294965888 }
  0x32   :  { %639 = dma.done.wait [#allocation9], 1024  }
  0x33   :  { %640 = vsyncadd [#allocation9], 4294966272  ;;  %v649_v0 = vmov 0.0   ;;  %vm650_vm0 = vmmov 0   ;;  %v510_v1 = vld [vmem:[#allocation5 + $0x10] sm:$0xff]   ;;  %v511_v2 = vld [vmem:[#allocation5 + $0x8] sm:$0xff]   ;;  %v383_v43 = vlaneseq }
  0x34   :  { %451 = vmatprep.subr.bf16.mxu0 %v649_v0  ;;  %457 = vmatprep.mubr.msk.bf16.mxu0 %vm650_vm0, %v649_v0  ;;  %v513_v3 = vld [vmem:[#allocation7 + $0x38] sm:$0xff]   ;;  %v512_v4 = vld [vmem:[#allocation5] sm:$0xff]   ;;  %vm113_vm1 = vcmask 392192   ;;  %v514_v5 = vld [vmem:[#allocation7 + $0x30] sm:$0xff]  }
  0x35   :  { %461 = vmatprep.subr.bf16.mxu1 %v649_v0  ;;  %477 = vmatprep.mubr.msk.bf16.mxu1 %vm650_vm0, %v649_v0  ;;  %v81_v6 = vld [vmem:[#allocation2] sm:$0xf]  ;;  %v515_v7 = vld [vmem:[#allocation7 + $0x28] sm:$0xff]   ;;  %v517_v9 = vld [vmem:[#allocation7 + $0x18] sm:$0xff]   ;;  %v384_v44 = vand.u32 127, %v383_v43 }
  0x36   :  { %452 = vmatpush3.bf16.msra.mxu0 %v510_v1  ;;  %462 = vmatpush3.bf16.msra.mxu1 %v513_v3  ;;  %v516_v8 = vld [vmem:[#allocation7 + $0x20] sm:$0xff]   ;;  %v518_v10 = vld [vmem:[#allocation7 + $0x10] sm:$0xff]   ;;  %v519_v11 = vld [vmem:[#allocation7 + $0x8] sm:$0xff]  }
  0x37   :  { %453 = vmatprep.subr.bf16.mxu0 %v649_v0  ;;  %463 = vmatprep.subr.bf16.mxu1 %v649_v0  ;;  %v520_v12 = vld [vmem:[#allocation7] sm:$0xff]   ;;  %v521_v13 = vld [vmem:[#allocation8 + $0x38] sm:$0xff]   ;;  %v522_v14 = vld [vmem:[#allocation8 + $0x30] sm:$0xff]   ;;  %vm385_vm2 = vcmp.lt.s32.totalorder %v384_v44, 4 }
  0x38   :  { %v523_v15 = vld [vmem:[#allocation8 + $0x28] sm:$0xff]   ;;  %v406_v16 = vld [vmem:[%s752_s2] ss:$0 sm:$0xff]  ;;  %v525_v25 = vld [vmem:[#allocation8 + $0x18] sm:$0xff]  }
  0x39   :  { %v524_v24 = vld [vmem:[#allocation8 + $0x20] sm:$0xff]   ;;  %v526_v26 = vld [vmem:[#allocation8 + $0x10] sm:$0xff]   ;;  %v527_v27 = vld [vmem:[#allocation8 + $0x8] sm:$0xff]  }
  0x3a   :  { %454 = vmatpush3.bf16.msra.mxu0 %v511_v2  ;;  %464 = vmatpush3.bf16.msra.mxu1 %v514_v5  ;;  %v528_v28 = vld [vmem:[#allocation8] sm:$0xff]  }
  0x3b   :  { %455 = vmatprep.subr.bf16.mxu0 %v649_v0  ;;  %465 = vmatprep.subr.bf16.mxu1 %v649_v0  ;;  %v411_v29 = vld [vmem:[%s754_s4] ss:$0 sm:$0xff]  ;;  %s651_s4 = smov [#allocation10]  }
  0x3c   :  { %v420_v37 = vld [vmem:[%s756_s6] ss:$0 sm:$0xff]  ;;  %s395_s24 = sshll.u32 %s651_s4, 4  ;;  %s396_s24 = int_to_ptr.vmem [resolvable:$true] %s395_s24 }
  0x3d   :  { %s615_s25 = scalar_lea.vmem %s396_s24, 128  ;;  %p620_p7 = scmp.lt.s32.totalorder %s396_s24, %s396_s24 }
  0x3e   :  { %456 = vmatpush3.bf16.msra.mxu0 %v512_v4  ;;  %466 = vmatpush3.bf16.msra.mxu1 %v515_v7  ;;  %p616_p6 = scmp.ne.s32.totalorder %s396_s24, %s615_s25  ;;  %p621_p8 = scmp.lt.s32.totalorder %s615_s25, %s615_s25 }
  0x3f   :  { %481 = vmatprep.subr.bf16.mxu0 %v649_v0  ;;  %467 = vmatprep.subr.bf16.mxu1 %v649_v0 }
  0x40   :  { %p622_p9 = por %p621_p8, %p620_p7 }
  0x41   :  { %458 = vmatmul.mubr.msk.bf16.vlgmr.msra.gmra.mxu0 %vm113_vm1, %v81_v6 }
  0x42   :  { %497 = vmatprep.mubr.msk.bf16.mxu0 %vm650_vm0, %v649_v0  ;;  %468 = vmatpush3.bf16.msra.mxu1 %v516_v8  ;;  %p623_p10 = pnand %p622_p9, %p616_p6 }
  0x43   :  { %469 = vmatprep.subr.bf16.mxu1 %v649_v0  ;;  %482 = vmatpush3.bf16.msra.mxu0 %v521_v13 }
  0x44   :  { %483 = vmatprep.subr.bf16.mxu0 %v649_v0 }
  0x46   :  { %470 = vmatpush3.bf16.msra.mxu1 %v517_v9 }
  0x47   :  { %471 = vmatprep.subr.bf16.mxu1 %v649_v0  ;;  %484 = vmatpush3.bf16.msra.mxu0 %v522_v14 }
  0x48   :  { %485 = vmatprep.subr.bf16.mxu0 %v649_v0 }
  0x4a   :  { %472 = vmatpush3.bf16.msra.mxu1 %v518_v10 }
  0x4b   :  { %473 = vmatprep.subr.bf16.mxu1 %v649_v0  ;;  %486 = vmatpush3.bf16.msra.mxu0 %v523_v15 }
  0x4c   :  { %487 = vmatprep.subr.bf16.mxu0 %v649_v0 }
  0x4e   :  { %474 = vmatpush3.bf16.msra.mxu1 %v519_v11 }
  0x4f   :  { %475 = vmatprep.subr.bf16.mxu1 %v649_v0  ;;  %488 = vmatpush3.bf16.msra.mxu0 %v524_v24 }
  0x50   :  { %489 = vmatprep.subr.bf16.mxu0 %v649_v0 }
  0x52   :  { %476 = vmatpush3.bf16.msra.mxu1 %v520_v12 }
  0x53   :  { %490 = vmatpush3.bf16.msra.mxu0 %v525_v25 }
  0x54   :  { %491 = vmatprep.subr.bf16.mxu0 %v649_v0 }
  0x57   :  { %492 = vmatpush3.bf16.msra.mxu0 %v526_v26 }
  0x58   :  { %493 = vmatprep.subr.bf16.mxu0 %v649_v0 }
  0x5b   :  { %494 = vmatpush3.bf16.msra.mxu0 %v527_v27 }
  0x5c   :  { %495 = vmatprep.subr.bf16.mxu0 %v649_v0 }
  0x5f   :  { %496 = vmatpush3.bf16.msra.mxu0 %v528_v28 }
 0x101   :  { %v151_v17 = vpop.f32.mrf.mxu0 }
 0x102   :  { %v152_v18 = vadd.f32 %v406_v16, %v151_v17 }
 0x103   :  { %v459_v19 = vpop.f32.mrf.mxu0 }
 0x104   :  { %529 = vtanh.f32 %v152_v18 }
 0x105   :  { %v154_v20 = vpop.f32.mrf.mxu0 }
 0x107   :  { %v460_v21 = vpop.f32.mrf.mxu0 }
 0x111   :  { %v530_v22 = vpop.eup %529 }
 0x112   :  { %v158_v23 = vpack.c.bf16 %v530_v22, %v530_v22 }
 0x114   :  { %478 = vmatmul.mubr.bf16.vlgmr.msra.gmra.mxu1 %v158_v23 }
 0x1d4   :  { %v264_v30 = vpop.f32.mrf.mxu1 }
 0x1d5   :  { %v265_v31 = vadd.f32 %v411_v29, %v264_v30 }
 0x1d6   :  { %v479_v32 = vpop.f32.mrf.mxu1 }
 0x1d7   :  { %531 = vtanh.f32 %v265_v31 }
 0x1d8   :  { %v267_v33 = vpop.f32.mrf.mxu1 }
 0x1da   :  { %v480_v34 = vpop.f32.mrf.mxu1 }
 0x1e4   :  { %v532_v35 = vpop.eup %531 }
 0x1e5   :  { %v271_v36 = vpack.c.bf16 %v532_v35, %v532_v35 }
 0x1e7   :  { %498 = vmatmul.mubr.bf16.vlgmr.msra.gmra.mxu0 %v271_v36 }
 0x2a7   :  { %v377_v38 = vpop.f32.mrf.mxu0 }
 0x2a8   :  { %v378_v39 = vadd.f32 %v420_v37, %v377_v38 }
 0x2a9   :  { %v499_v40 = vpop.f32.mrf.mxu0 }
 0x2aa   :  { %533 = vtanh.f32 %v378_v39 }
 0x2ab   :  { %v380_v41 = vpop.f32.mrf.mxu0 }
 0x2ad   :  { %v500_v42 = vpop.f32.mrf.mxu0 }
 0x2b7   :  { %v534_v45 = vpop.eup %533 }
 0x2b8   :  { %v387_v46 = vsel %vm385_vm2, %v534_v45, %v378_v39 }
 0x2b9   :  { %388 = vst [vmem:[#allocation10] sm:$0xff] %v387_v46 }
 0x2ba   :  { %626 = shalt.err (!%p623_p10)
}
 0x2bb   :  { %398 = dma.vmem_to_hbm [thread:$0]  %s396_s24, 128, %s757_s7, [#allocation4]  }
 0x2bc   :  { %641 = dma.done.wait [#allocation4], 128  }
 0x2bd   :  { %642 = vsyncadd [#allocation4], 4294967168 }
 0x2be   :  { %402 = vsyncpa [#allocation3], 1 }
 0x2bf   :  { %403 = vsyncpa [#allocation6], 1 }
 0x2c0   :  { %404 = vsyncpa [#allocation9], 1 }
 0x2c1   :  { %405 = vsyncpa [#allocation4], 1 }

// kernel: tpu_custom_call.1
= control target key start
LH: loop header
LB: loop body
LE: loop exit
PB: predicated region body
PF: predicated region fallthrough
CT: control target
= control target key end

     0   :  { %12 = vsyncpa [#allocation3], 0  ;;  %s750_s0 = inlined_call_operand.hbm [shape: bf16[8,48], index: 0, kind: input, shape index: {}]   ;;  %s751_s1 = inlined_call_operand.hbm [shape: bf16[48,128], index: 1, kind: input, shape index: {}]   ;;  %s752_s2 = inlined_call_operand.vmem [shape: f32[1,128], index: 2, kind: input, shape index: {}]   ;;  %s753_s3 = inlined_call_operand.hbm [shape: bf16[128,128], index: 3, kind: input, shape index: {}]   ;;  %s754_s4 = inlined_call_operand.vmem [shape: f32[1,128], index: 4, kind: input, shape index: {}]   ;;  %s755_s5 = inlined_call_operand.hbm [shape: bf16[128,128], index: 5, kind: input, shape index: {}]   ;;  %s756_s6 = inlined_call_operand.vmem [shape: f32[1,128], index: 6, kind: input, shape index: {}]   ;;  %s757_s7 = inlined_call_operand.hbm [shape: f32[8,128], index: 7, kind: output, shape index: {}]  }
   0x1   :  { %13 = vsyncpa [#allocation6], 0 }
   0x2   :  { %14 = vsyncpa [#allocation9], 0 }
   0x3   :  { %15 = vsyncpa [#allocation4], 0  ;;  %s643_s24 = smov [#allocation5]  }
   0x4   :  { %s31_s25 = sshll.u32 %s643_s24, 4  ;;  %s32_s25 = int_to_ptr.vmem [resolvable:$true] %s31_s25 }
   0x5   :  { %s543_s26 = scalar_lea.vmem %s32_s25, 384  ;;  %p548_p1 = scmp.lt.s32.totalorder %s32_s25, %s32_s25 }
   0x6   :  { %p544_p0 = scmp.ne.s32.totalorder %s32_s25, %s543_s26  ;;  %p549_p2 = scmp.lt.s32.totalorder %s543_s26, %s543_s26 }
   0x8   :  { %p550_p3 = por %p549_p2, %p548_p1 }
   0xa   :  { %p551_p4 = pnand %p550_p3, %p544_p0 }
   0xc   :  { %554 = shalt.err (!%p551_p4)
}
   0xd   :  { %s644_s27 = smov 64   ;;  %s645_s28 = smov 4  }
   0xe   :  { %37 = dma.hbm_to_vmem [thread:$0]  %s751_s1, 384, %s32_s25, [#allocation6], %s644_s27, %s644_s27, %s645_s28  }
   0xf   :  { %s646_s8 = smov [#allocation2]   ;;  %s647_s10 = smov [#allocation7]  }
  0x10   :  { %s22_s9 = sshll.u32 %s646_s8, 4  ;;  %s45_s11 = sshll.u32 %s647_s10, 4  ;;  %s23_s9 = int_to_ptr.vmem [resolvable:$true] %s22_s9  ;;  %s46_s11 = int_to_ptr.vmem [resolvable:$true] %s45_s11 }
  0x11   :  { %s563_s12 = scalar_lea.vmem %s23_s9, 64  ;;  %p568_p6 = scmp.lt.s32.totalorder %s23_s9, %s23_s9 }
  0x12   :  { %p564_p5 = scmp.ne.s32.totalorder %s23_s9, %s563_s12  ;;  %p569_p7 = scmp.lt.s32.totalorder %s563_s12, %s563_s12 }
  0x14   :  { %p570_p8 = por %p569_p7, %p568_p6 }
  0x16   :  { %p571_p9 = pnand %p570_p8, %p564_p5 }
  0x18   :  { %574 = shalt.err (!%p571_p9)
}
  0x19   :  { %25 = dma.hbm_to_vmem [thread:$0]  %s750_s0, 64, %s23_s9, [#allocation3]  }
  0x1a   :  { %s583_s15 = scalar_lea.vmem %s46_s11, 1024  ;;  %p588_p11 = scmp.lt.s32.totalorder %s46_s11, %s46_s11 }
  0x1b   :  { %p584_p10 = scmp.ne.s32.totalorder %s46_s11, %s583_s15  ;;  %p589_p12 = scmp.lt.s32.totalorder %s583_s15, %s583_s15 }
  0x1d   :  { %p590_p13 = por %p589_p12, %p588_p11 }
  0x1f   :  { %p591_p0 = pnand %p590_p13, %p584_p10 }
  0x21   :  { %594 = shalt.err (!%p591_p0)
}
  0x22   :  { %51 = dma.hbm_to_vmem [thread:$0]  %s753_s3, 1024, %s46_s11, [#allocation6], %s644_s27, %s644_s27, %s645_s28  }
  0x23   :  { %s648_s17 = smov [#allocation8]  }
  0x24   :  { %s59_s18 = sshll.u32 %s648_s17, 4  ;;  %s60_s18 = int_to_ptr.vmem [resolvable:$true] %s59_s18 }
  0x25   :  { %s603_s19 = scalar_lea.vmem %s60_s18, 1024  ;;  %p608_p2 = scmp.lt.s32.totalorder %s60_s18, %s60_s18 }
  0x26   :  { %p604_p1 = scmp.ne.s32.totalorder %s60_s18, %s603_s19  ;;  %p609_p3 = scmp.lt.s32.totalorder %s603_s19, %s603_s19 }
  0x28   :  { %p610_p4 = por %p609_p3, %p608_p2 }
  0x2a   :  { %p611_p5 = pnand %p610_p4, %p604_p1 }
  0x2c   :  { %614 = shalt.err (!%p611_p5)
}
  0x2d   :  { %65 = dma.hbm_to_vmem [thread:$0]  %s755_s5, 1024, %s60_s18, [#allocation9], %s644_s27, %s644_s27, %s645_s28  }
  0x2e   :  { %635 = dma.done.wait [#allocation3], 64  }
  0x2f   :  { %636 = vsyncadd [#allocation3], 4294967232 }
  0x30   :  { %637 = dma.done.wait [#allocation6], 1408  }
  0x31   :  { %638 = vsyncadd [#allocation6], 4294965888 }
  0x32   :  { %639 = dma.done.wait [#allocation9], 1024  }
  0x33   :  { %640 = vsyncadd [#allocation9], 4294966272  ;;  %v649_v0 = vmov 0.0   ;;  %vm650_vm0 = vmmov 0   ;;  %v510_v1 = vld [vmem:[#allocation5 + $0x10] sm:$0xff]   ;;  %v511_v2 = vld [vmem:[#allocation5 + $0x8] sm:$0xff]   ;;  %v383_v43 = vlaneseq }
  0x34   :  { %451 = vmatprep.subr.bf16.mxu0 %v649_v0  ;;  %457 = vmatprep.mubr.msk.bf16.mxu0 %vm650_vm0, %v649_v0  ;;  %v513_v3 = vld [vmem:[#allocation7 + $0x38] sm:$0xff]   ;;  %v512_v4 = vld [vmem:[#allocation5] sm:$0xff]   ;;  %vm113_vm1 = vcmask 392192   ;;  %v514_v5 = vld [vmem:[#allocation7 + $0x30] sm:$0xff]  }
  0x35   :  { %461 = vmatprep.subr.bf16.mxu1 %v649_v0  ;;  %477 = vmatprep.mubr.msk.bf16.mxu1 %vm650_vm0, %v649_v0  ;;  %v81_v6 = vld [vmem:[#allocation2] sm:$0xf]  ;;  %v515_v7 = vld [vmem:[#allocation7 + $0x28] sm:$0xff]   ;;  %v517_v9 = vld [vmem:[#allocation7 + $0x18] sm:$0xff]   ;;  %v384_v44 = vand.u32 127, %v383_v43 }
  0x36   :  { %452 = vmatpush3.bf16.msra.mxu0 %v510_v1  ;;  %462 = vmatpush3.bf16.msra.mxu1 %v513_v3  ;;  %v516_v8 = vld [vmem:[#allocation7 + $0x20] sm:$0xff]   ;;  %v518_v10 = vld [vmem:[#allocation7 + $0x10] sm:$0xff]   ;;  %v519_v11 = vld [vmem:[#allocation7 + $0x8] sm:$0xff]  }
  0x37   :  { %453 = vmatprep.subr.bf16.mxu0 %v649_v0  ;;  %463 = vmatprep.subr.bf16.mxu1 %v649_v0  ;;  %v520_v12 = vld [vmem:[#allocation7] sm:$0xff]   ;;  %v521_v13 = vld [vmem:[#allocation8 + $0x38] sm:$0xff]   ;;  %v522_v14 = vld [vmem:[#allocation8 + $0x30] sm:$0xff]   ;;  %vm385_vm2 = vcmp.lt.s32.totalorder %v384_v44, 4 }
  0x38   :  { %v523_v15 = vld [vmem:[#allocation8 + $0x28] sm:$0xff]   ;;  %v406_v16 = vld [vmem:[%s752_s2] ss:$0 sm:$0xff]  ;;  %v525_v25 = vld [vmem:[#allocation8 + $0x18] sm:$0xff]  }
  0x39   :  { %v524_v24 = vld [vmem:[#allocation8 + $0x20] sm:$0xff]   ;;  %v526_v26 = vld [vmem:[#allocation8 + $0x10] sm:$0xff]   ;;  %v527_v27 = vld [vmem:[#allocation8 + $0x8] sm:$0xff]  }
  0x3a   :  { %454 = vmatpush3.bf16.msra.mxu0 %v511_v2  ;;  %464 = vmatpush3.bf16.msra.mxu1 %v514_v5  ;;  %v528_v28 = vld [vmem:[#allocation8] sm:$0xff]  }
  0x3b   :  { %455 = vmatprep.subr.bf16.mxu0 %v649_v0  ;;  %465 = vmatprep.subr.bf16.mxu1 %v649_v0  ;;  %v411_v29 = vld [vmem:[%s754_s4] ss:$0 sm:$0xff]  ;;  %s651_s4 = smov [#allocation10]  }
  0x3c   :  { %v420_v37 = vld [vmem:[%s756_s6] ss:$0 sm:$0xff]  ;;  %s395_s24 = sshll.u32 %s651_s4, 4  ;;  %s396_s24 = int_to_ptr.vmem [resolvable:$true] %s395_s24 }
  0x3d   :  { %s615_s25 = scalar_lea.vmem %s396_s24, 128  ;;  %p620_p7 = scmp.lt.s32.totalorder %s396_s24, %s396_s24 }
  0x3e   :  { %456 = vmatpush3.bf16.msra.mxu0 %v512_v4  ;;  %466 = vmatpush3.bf16.msra.mxu1 %v515_v7  ;;  %p616_p6 = scmp.ne.s32.totalorder %s396_s24, %s615_s25  ;;  %p621_p8 = scmp.lt.s32.totalorder %s615_s25, %s615_s25 }
  0x3f   :  { %481 = vmatprep.subr.bf16.mxu0 %v649_v0  ;;  %467 = vmatprep.subr.bf16.mxu1 %v649_v0 }
  0x40   :  { %p622_p9 = por %p621_p8, %p620_p7 }
  0x41   :  { %458 = vmatmul.mubr.msk.bf16.vlgmr.msra.gmra.mxu0 %vm113_vm1, %v81_v6 }
  0x42   :  { %497 = vmatprep.mubr.msk.bf16.mxu0 %vm650_vm0, %v649_v0  ;;  %468 = vmatpush3.bf16.msra.mxu1 %v516_v8  ;;  %p623_p10 = pnand %p622_p9, %p616_p6 }
  0x43   :  { %469 = vmatprep.subr.bf16.mxu1 %v649_v0  ;;  %482 = vmatpush3.bf16.msra.mxu0 %v521_v13 }
  0x44   :  { %483 = vmatprep.subr.bf16.mxu0 %v649_v0 }
  0x46   :  { %470 = vmatpush3.bf16.msra.mxu1 %v517_v9 }
  0x47   :  { %471 = vmatprep.subr.bf16.mxu1 %v649_v0  ;;  %484 = vmatpush3.bf16.msra.mxu0 %v522_v14 }
  0x48   :  { %485 = vmatprep.subr.bf16.mxu0 %v649_v0 }
  0x4a   :  { %472 = vmatpush3.bf16.msra.mxu1 %v518_v10 }
  0x4b   :  { %473 = vmatprep.subr.bf16.mxu1 %v649_v0  ;;  %486 = vmatpush3.bf16.msra.mxu0 %v523_v15 }
  0x4c   :  { %487 = vmatprep.subr.bf16.mxu0 %v649_v0 }
  0x4e   :  { %474 = vmatpush3.bf16.msra.mxu1 %v519_v11 }
  0x4f   :  { %475 = vmatprep.subr.bf16.mxu1 %v649_v0  ;;  %488 = vmatpush3.bf16.msra.mxu0 %v524_v24 }
  0x50   :  { %489 = vmatprep.subr.bf16.mxu0 %v649_v0 }
  0x52   :  { %476 = vmatpush3.bf16.msra.mxu1 %v520_v12 }
  0x53   :  { %490 = vmatpush3.bf16.msra.mxu0 %v525_v25 }
  0x54   :  { %491 = vmatprep.subr.bf16.mxu0 %v649_v0 }
  0x57   :  { %492 = vmatpush3.bf16.msra.mxu0 %v526_v26 }
  0x58   :  { %493 = vmatprep.subr.bf16.mxu0 %v649_v0 }
  0x5b   :  { %494 = vmatpush3.bf16.msra.mxu0 %v527_v27 }
  0x5c   :  { %495 = vmatprep.subr.bf16.mxu0 %v649_v0 }
  0x5f   :  { %496 = vmatpush3.bf16.msra.mxu0 %v528_v28 }
 0x101   :  { %v151_v17 = vpop.f32.mrf.mxu0 }
 0x102   :  { %v152_v18 = vadd.f32 %v406_v16, %v151_v17 }
 0x103   :  { %v459_v19 = vpop.f32.mrf.mxu0 }
 0x104   :  { %529 = vtanh.f32 %v152_v18 }
 0x105   :  { %v154_v20 = vpop.f32.mrf.mxu0 }
 0x107   :  { %v460_v21 = vpop.f32.mrf.mxu0 }
 0x111   :  { %v530_v22 = vpop.eup %529 }
 0x112   :  { %v158_v23 = vpack.c.bf16 %v530_v22, %v530_v22 }
 0x114   :  { %478 = vmatmul.mubr.bf16.vlgmr.msra.gmra.mxu1 %v158_v23 }
 0x1d4   :  { %v264_v30 = vpop.f32.mrf.mxu1 }
 0x1d5   :  { %v265_v31 = vadd.f32 %v411_v29, %v264_v30 }
 0x1d6   :  { %v479_v32 = vpop.f32.mrf.mxu1 }
 0x1d7   :  { %531 = vtanh.f32 %v265_v31 }
 0x1d8   :  { %v267_v33 = vpop.f32.mrf.mxu1 }
 0x1da   :  { %v480_v34 = vpop.f32.mrf.mxu1 }
 0x1e4   :  { %v532_v35 = vpop.eup %531 }
 0x1e5   :  { %v271_v36 = vpack.c.bf16 %v532_v35, %v532_v35 }
 0x1e7   :  { %498 = vmatmul.mubr.bf16.vlgmr.msra.gmra.mxu0 %v271_v36 }
 0x2a7   :  { %v377_v38 = vpop.f32.mrf.mxu0 }
 0x2a8   :  { %v378_v39 = vadd.f32 %v420_v37, %v377_v38 }
 0x2a9   :  { %v499_v40 = vpop.f32.mrf.mxu0 }
 0x2aa   :  { %533 = vtanh.f32 %v378_v39 }
 0x2ab   :  { %v380_v41 = vpop.f32.mrf.mxu0 }
 0x2ad   :  { %v500_v42 = vpop.f32.mrf.mxu0 }
 0x2b7   :  { %v534_v45 = vpop.eup %533 }
 0x2b8   :  { %v387_v46 = vsel %vm385_vm2, %v534_v45, %v378_v39 }
 0x2b9   :  { %388 = vst [vmem:[#allocation10] sm:$0xff] %v387_v46 }
 0x2ba   :  { %626 = shalt.err (!%p623_p10)
}
 0x2bb   :  { %398 = dma.vmem_to_hbm [thread:$0]  %s396_s24, 128, %s757_s7, [#allocation4]  }
 0x2bc   :  { %641 = dma.done.wait [#allocation4], 128  }
 0x2bd   :  { %642 = vsyncadd [#allocation4], 4294967168 }
 0x2be   :  { %402 = vsyncpa [#allocation3], 1 }
 0x2bf   :  { %403 = vsyncpa [#allocation6], 1 }
 0x2c0   :  { %404 = vsyncpa [#allocation9], 1 }
 0x2c1   :  { %405 = vsyncpa [#allocation4], 1 }

</bundles_post_ra>
